<compile_context>
chip_gen: v7x
topology: tpu7x:2x2x1
jax: 0.10.0
libtpu: 0.0.40
codegen_flags: <defaults>
</compile_context>

<pallas_src>
import functools

import jax
import jax.numpy as jnp
import numpy as np
from jax.experimental import pallas as pl
from jax.experimental.pallas import tpu as pltpu

_LANE = 128


def _round_up(x, m):
    return (x + m - 1) // m * m


def _largest_divisor_leq(n, cap):
    for c in range(min(n, max(cap, 1)), 0, -1):
        if n % c == 0:
            return c
    return 1


@functools.lru_cache(maxsize=None)
def _roll_matches_numpy() -> bool:
    """Pin down pltpu.roll's rotation convention with a tiny probe kernel so
    conv2's +/-1 neighbour shifts are correct regardless of convention."""

    def probe(x_ref, o_ref):
        o_ref[...] = pltpu.roll(x_ref[...], 1, 1)

    x = jnp.broadcast_to(jnp.arange(_LANE, dtype=jnp.float32), (8, _LANE))
    out = pl.pallas_call(
        probe, out_shape=jax.ShapeDtypeStruct((8, _LANE), jnp.float32))(x)
    # np.roll(x, 1, axis=1)[:, 0] == 127 ; the opposite convention gives 1.
    return bool(np.asarray(out)[0, 0] == float(_LANE - 1))


def _make_resblock_kernel(C_in, C_out, NB, L, Lp, K, dilation, sc_off,
                          identity_shortcut, roll_matches_numpy):
    """Kernel computing NB batch elements of the ResBlock on (.., Lp) tiles."""
    d = dilation
    if roll_matches_numpy:            # rolled[i] = h[i - shift]
        prev_shift, next_shift = 1, Lp - 1
    else:                             # rolled[i] = h[i + shift]
        prev_shift, next_shift = Lp - 1, 1

    def kernel(*refs):
        if identity_shortcut:
            xp_ref, w1_ref, b1_ref, w2_ref, b2_ref, o_ref = refs
            ws_ref = bs_ref = None
        else:
            (xp_ref, w1_ref, b1_ref, w2_ref, b2_ref, ws_ref, bs_ref,
             o_ref) = refs

        # ---- hoisted loads: weights/biases/iota shared by all NB elements ---
        w1 = [w1_ref[t] for t in range(K)]          # each (C_out, C_in)
        w2 = [w2_ref[t] for t in range(3)]          # each (C_out, C_out)
        b1 = b1_ref[...]                            # (C_out, 1) f32
        b2 = b2_ref[...]
        if not identity_shortcut:
            ws = [ws_ref[t] for t in range(K)]
            bs = bs_ref[...]
        col = jax.lax.broadcasted_iota(jnp.int32, (C_out, Lp), 1)

        for b in range(NB):                         # static unroll over batch
            x_b = xp_ref.at[b]                      # 2-D Ref view (C_in, Wp)

            # ---- conv1 (kernel_size=K, dilation=d, padding='same') + ReLU ----
            acc1 = jnp.dot(w1[0], x_b[:, 0:Lp],
                           preferred_element_type=jnp.float32)
            for t in range(1, K):
                acc1 += jnp.dot(w1[t], x_b[:, t * d:t * d + Lp],
                                preferred_element_type=jnp.float32)
            h = jnp.maximum(acc1 + b1, 0.0)          # (C_out, Lp) f32

            # Columns >= L are conv outputs over the alignment padding; conv2's
            # pad=1 must see zeros there, so mask them off.
            if Lp > L:
                h = jnp.where(col < L, h, 0.0)
            hc = h.astype(x_b.dtype)

            # ---- conv2 (kernel_size=3, padding=1) + ReLU ---------------------
            # +/-1 neighbours via XLU roll + edge masks -- no scratch buffer,
            # no zero fill, no misaligned stores.
            zero = jnp.zeros_like(hc)
            h_prev = jnp.where(col == 0, zero, pltpu.roll(hc, prev_shift, 1))
            h_next = jnp.where(col == Lp - 1, zero,
                               pltpu.roll(hc, next_shift, 1))
            acc2 = jnp.dot(w2[1], hc, preferred_element_type=jnp.float32)
            acc2 += jnp.dot(w2[0], h_prev, preferred_element_type=jnp.float32)
            acc2 += jnp.dot(w2[2], h_next, preferred_element_type=jnp.float32)
            r = jnp.maximum(acc2 + b2, 0.0)          # (C_out, Lp) f32

            # ---- shortcut: different static window of the SAME padded input --
            if identity_shortcut:
                sc = x_b[:, sc_off:sc_off + Lp].astype(jnp.float32)
            else:
                acc3 = jnp.dot(ws[0], x_b[:, sc_off:sc_off + Lp],
                               preferred_element_type=jnp.float32)
                for t in range(1, K):
                    acc3 += jnp.dot(ws[t],
                                    x_b[:, sc_off + t:sc_off + t + Lp],
                                    preferred_element_type=jnp.float32)
                sc = acc3 + bs

            # ---- add + ReLU --------------------------------------------------
            o_ref[b] = jnp.maximum(sc + r, 0.0).astype(o_ref.dtype)

    return kernel


def resblock_forward(x, params, *, kernel_size, dilation_rate,
                     compute_dtype=jnp.float32, max_batch_block=8):
    """Pallas ResBlock forward.  x: (N, C_in, L)."""
    N, C_in, L = x.shape
    w1, b1, w2, b2 = params["w1"], params["b1"], params["w2"], params["b2"]
    ws, bs = params.get("ws"), params.get("bs")
    C_out = w1.shape[0]
    K, d = kernel_size, dilation_rate
    identity_shortcut = ws is None

    # explicit shape assumptions
    assert w1.shape == (C_out, C_in, K), w1.shape
    assert w2.shape == (C_out, C_out, 3), "conv2 is hard-wired to kernel_size=3"
    if identity_shortcut:
        assert C_in == C_out, "identity shortcut needs in_channels == out_channels"
    else:
        assert ws.shape == (C_out, C_in, K), ws.shape

    cdt = jnp.dtype(compute_dtype)
    out_dtype = x.dtype

    # 'same' padding geometry (matches PyTorch: left = total // 2)
    tot1 = d * (K - 1)               # conv1 (dilated) total pad
    l1 = tot1 // 2                   # conv1 left pad
    ls = (K - 1) // 2                # shortcut-conv left pad (dilation=1)
    sc_off = l1 if identity_shortcut else l1 - ls

    # lane-dense length + a single padded activation serving conv1 AND shortcut
    Lp = _round_up(max(L, _LANE), _LANE)
    Wp = _round_up(Lp + tot1, _LANE)
    xp = jnp.pad(x.astype(cdt), ((0, 0), (0, 0), (l1, Wp - l1 - L)))

    # weights pre-transposed to (K, C_out, C_in): each tap is an MXU matrix
    w1_t = jnp.transpose(w1, (2, 0, 1)).astype(cdt)
    w2_t = jnp.transpose(w2, (2, 0, 1)).astype(cdt)
    b1_c = b1.reshape(C_out, 1).astype(jnp.float32)
    b2_c = b2.reshape(C_out, 1).astype(jnp.float32)

    # ---- batch blocking: amortise per-step overhead over NB batch elements ---
    in_item = cdt.itemsize
    out_item = jnp.dtype(out_dtype).itemsize
    per_b = C_in * Wp * in_item + C_out * Lp * out_item
    nb_vmem = max(1, int((8 * 2**20) // max(2 * per_b, 1)))   # ~8 MiB of blocks
    NB = _largest_divisor_leq(N, min(max_batch_block, nb_vmem))

    kernel = _make_resblock_kernel(C_in, C_out, NB, L, Lp, K, d, sc_off,
                                   identity_shortcut, _roll_matches_numpy())

    in_specs = [
        pl.BlockSpec((NB, C_in, Wp), lambda n: (n, 0, 0)),
        pl.BlockSpec((K, C_out, C_in), lambda n: (0, 0, 0)),
        pl.BlockSpec((C_out, 1), lambda n: (0, 0)),
        pl.BlockSpec((3, C_out, C_out), lambda n: (0, 0, 0)),
        pl.BlockSpec((C_out, 1), lambda n: (0, 0)),
    ]
    args = [xp, w1_t, b1_c, w2_t, b2_c]
    if not identity_shortcut:
        ws_t = jnp.transpose(ws, (2, 0, 1)).astype(cdt)
        bs_c = bs.reshape(C_out, 1).astype(jnp.float32)
        in_specs += [
            pl.BlockSpec((K, C_out, C_in), lambda n: (0, 0, 0)),
            pl.BlockSpec((C_out, 1), lambda n: (0, 0)),
        ]
        args += [ws_t, bs_c]

    # explicit scoped-VMEM budget: blocks double-buffered + f32 temporaries
    weight_bytes = sum(int(a.size) * a.dtype.itemsize for a in args[1:])
    block_bytes = NB * per_b + weight_bytes
    needed = 2 * block_bytes + 16 * C_out * Lp * 4
    vmem_limit = int(min(max(2 * needed, 32 * 2**20), 64 * 2**20))

    grid_spec = pltpu.PrefetchScalarGridSpec(
        num_scalar_prefetch=0,
        grid=(N // NB,),
        in_specs=in_specs,
        out_specs=pl.BlockSpec((NB, C_out, Lp), lambda n: (n, 0, 0)),
    )

    out = pl.pallas_call(
        kernel,
        out_shape=jax.ShapeDtypeStruct((N, C_out, Lp), out_dtype),
        grid_spec=grid_spec,
        compiler_params=pltpu.CompilerParams(
            dimension_semantics=("parallel",),
            vmem_limit_bytes=vmem_limit),
    )(*args)
    return out[:, :, :L]


# ---------------------------------------------------------------------------
# Pure-JAX reference (mirrors PyTorch Conv1d semantics) for verification.
# ---------------------------------------------------------------------------
def _conv1d_ref(x, w, b, dilation, pad_lr):
    out = jax.lax.conv_general_dilated(
        x, w, window_strides=(1,), padding=[pad_lr],
        rhs_dilation=(dilation,), dimension_numbers=("NCH", "OIH", "NCH"))
    return out + b[None, :, None]


def resblock_ref(x, params, *, kernel_size, dilation_rate):
    K, d = kernel_size, dilation_rate
    tot1 = d * (K - 1)
    r = _conv1d_ref(x, params["w1"], params["b1"], d,
                    (tot1 // 2, tot1 - tot1 // 2))
    r = jnp.maximum(r, 0.0)
    r = _conv1d_ref(r, params["w2"], params["b2"], 1, (1, 1))
    r = jnp.maximum(r, 0.0)
    if params.get("ws") is None:
        sc = x
    else:
        tots = K - 1
        sc = _conv1d_ref(x, params["ws"], params["bs"], 1,
                         (tots // 2, tots - tots // 2))
    return jnp.maximum(sc + r, 0.0)


if __name__ == "__main__":
    N, C_in, C_out, L = 4, 4, 8, 16
    kernel_size, dilation_rate = 3, 2

    key = jax.random.PRNGKey(0)
    k = jax.random.split(key, 10)

    def uinit(kk, shape, fan_in):
        bound = 1.0 / np.sqrt(fan_in)
        return jax.random.uniform(kk, shape, jnp.float32, -bound, bound)

    # Case 1: in_channels != out_channels -> Conv1d shortcut (padding='same').
    # max_batch_block=2 -> NB=2, grid=(2,): exercises the multi-step pipeline.
    params = {
        "w1": uinit(k[0], (C_out, C_in, kernel_size), C_in * kernel_size),
        "b1": uinit(k[1], (C_out,), C_in * kernel_size),
        "w2": uinit(k[2], (C_out, C_out, 3), C_out * 3),
        "b2": uinit(k[3], (C_out,), C_out * 3),
        "ws": uinit(k[4], (C_out, C_in, kernel_size), C_in * kernel_size),
        "bs": uinit(k[5], (C_out,), C_in * kernel_size),
    }
    x = jax.random.normal(k[6], (N, C_in, L), jnp.float32)

    out = jax.block_until_ready(
        resblock_forward(x, params, kernel_size=kernel_size,
                         dilation_rate=dilation_rate, max_batch_block=2))
    ref = resblock_ref(x, params, kernel_size=kernel_size,
                       dilation_rate=dilation_rate)
    np.testing.assert_allclose(np.asarray(out), np.asarray(ref),
                               rtol=1e-5, atol=1e-5)

    # bf16 compute path (halved activation VMEM traffic, bf16 MXU rate);
    # default max_batch_block -> NB=4, grid=(1,): exercises full-batch blocking.
    out_bf16 = jax.block_until_ready(
        resblock_forward(x, params, kernel_size=kernel_size,
                         dilation_rate=dilation_rate,
                         compute_dtype=jnp.bfloat16))
    np.testing.assert_allclose(np.asarray(out_bf16), np.asarray(ref),
                               rtol=5e-2, atol=5e-2)

    # Case 2: in_channels == out_channels -> identity shortcut
    params_id = {
        "w1": uinit(k[7], (C_out, C_out, kernel_size), C_out * kernel_size),
        "b1": uinit(k[8], (C_out,), C_out * kernel_size),
        "w2": params["w2"],
        "b2": params["b2"],
    }
    x_id = jax.random.normal(k[9], (2, C_out, L), jnp.float32)
    out_id = jax.block_until_ready(
        resblock_forward(x_id, params_id, kernel_size=kernel_size,
                         dilation_rate=dilation_rate))
    ref_id = resblock_ref(x_id, params_id, kernel_size=kernel_size,
                          dilation_rate=dilation_rate)
    np.testing.assert_allclose(np.asarray(out_id), np.asarray(ref_id),
                               rtol=1e-5, atol=1e-5)

    print("KERNEL_OK")
</pallas_src>

<mosaic_0001>
module attributes {stable_mosaic.version = 11 : i64} {
  func.func @probe(%arg0: memref<8x128xf32, #tpu.memory_space<vmem>>, %arg1: memref<8x128xf32, #tpu.memory_space<vmem>>) attributes {dimension_semantics = [], scalar_prefetch = 0 : i64, scratch_operands = 0 : i64, tpu.core_type = #tpu.core_type<tc>} {
    %c0 = arith.constant 0 : index
    %c0_0 = arith.constant 0 : index
    %0 = vector.load %arg0[%c0, %c0_0] : memref<8x128xf32, #tpu.memory_space<vmem>>, vector<8x128xf32>
    %c1_i32 = arith.constant 1 : i32
    %1 = tpu.dynamic_rotate %0 by %c1_i32 dim 1 : vector<8x128xf32>, i32 -> vector<8x128xf32>
    %c0_1 = arith.constant 0 : index
    %c0_2 = arith.constant 0 : index
    %2 = vector.load %arg1[%c0_1, %c0_2] : memref<8x128xf32, #tpu.memory_space<vmem>>, vector<8x128xf32>
    tpu.vector_store %arg1[%c0_1, %c0_2], %1 {strides = array<i32>} : memref<8x128xf32, #tpu.memory_space<vmem>>, vector<8x128xf32>,
    return
  }
}

</mosaic_0001>

<bundles_post_ra>
// kernel: tpu_custom_call.1
= control target key start
LH: loop header
LB: loop body
LE: loop exit
PB: predicated region body
PF: predicated region fallthrough
CT: control target
= control target key end

     0   :  { %6 = vsyncpa [#allocation3], 0  ;;  %s128_s0 = inlined_call_operand.hbm [shape: f32[8,128], index: 0, kind: input, shape index: {}]   ;;  %s129_s1 = inlined_call_operand.hbm [shape: f32[8,128], index: 1, kind: output, shape index: {}]  }
   0x1   :  { %7 = vsyncpa [#allocation4], 0  ;;  %s91_s6 = smov [#allocation2]   ;;  %s43_s10 = scalar_lea.hbm %s128_s0, 128 }
   0x2   :  { %s14_s7 = sshll.u32 %s91_s6, 4  ;;  %p44_p0 = scmp.ne.s32.totalorder %s128_s0, %s43_s10  ;;  %s15_s7 = int_to_ptr.vmem [resolvable:$true] %s14_s7 }
   0x3   :  { %p47_p1 = scmp.lt.u32.totalorder %s43_s10, %s128_s0 }
   0x5   :  { %p49_p2 = pnand %p47_p1, %p44_p0 }
   0x7   :  { %52 = shalt.err (!%p49_p2)
}
   0x8   :  { %s53_s15 = scalar_lea.vmem %s15_s7, 128  ;;  %p58_p4 = scmp.lt.s32.totalorder %s15_s7, %s15_s7 }
   0x9   :  { %p54_p3 = scmp.ne.s32.totalorder %s15_s7, %s53_s15  ;;  %p59_p5 = scmp.lt.s32.totalorder %s53_s15, %s53_s15 }
   0xb   :  { %p60_p6 = por %p59_p5, %p58_p4 }
   0xd   :  { %p61_p7 = pnand %p60_p6, %p54_p3 }
   0xf   :  { %64 = shalt.err (!%p61_p7)
}
  0x10   :  { %17 = dma.hbm_to_vmem [thread:$0]  %s128_s0, 128, %s15_s7, [#allocation3]  }
  0x11   :  { %87 = dma.done.wait [#allocation3], 128  }
  0x12   :  { %88 = vsyncadd [#allocation3], 4294967168  ;;  %v21_v0 = vld [vmem:[#allocation2] sm:$0xff]  ;;  %s92_s18 = smov 1   ;;  %s93_s19 = smov [#allocation5]  }
  0x13   :  { %22 = vrot.lane.b32.xlu0 %v21_v0, %s92_s18  ;;  %s31_s20 = sshll.u32 %s93_s19, 4  ;;  %s32_s20 = int_to_ptr.vmem [resolvable:$true] %s31_s20 }
  0x14   :  { %s65_s21 = scalar_lea.vmem %s32_s20, 128  ;;  %p70_p9 = scmp.lt.s32.totalorder %s32_s20, %s32_s20 }
  0x15   :  { %p66_p8 = scmp.ne.s32.totalorder %s32_s20, %s65_s21  ;;  %p71_p10 = scmp.lt.s32.totalorder %s65_s21, %s65_s21 }
  0x17   :  { %p72_p11 = por %p71_p10, %p70_p9 }
  0x19   :  { %p73_p12 = pnand %p72_p11, %p66_p8 }
  0x85   :  { %v23_v1 = vpop.permute.xlu0 %22 }
  0x86   :  { %24 = vst [vmem:[#allocation5] sm:$0xff] %v23_v1 }
  0x87   :  { %76 = shalt.err (!%p73_p12)
}
  0x88   :  { %s77_s0 = scalar_lea.hbm %s129_s1, 128 }
  0x89   :  { %p78_p13 = scmp.ne.s32.totalorder %s129_s1, %s77_s0  ;;  %p81_p0 = scmp.lt.u32.totalorder %s77_s0, %s129_s1 }
  0x8b   :  { %p83_p1 = pnand %p81_p0, %p78_p13 }
  0x8d   :  { %86 = shalt.err (!%p83_p1)
}
  0x8e   :  { %34 = dma.vmem_to_hbm [thread:$0]  %s32_s20, 128, %s129_s1, [#allocation4]  }
  0x8f   :  { %89 = dma.done.wait [#allocation4], 128  }
  0x90   :  { %90 = vsyncadd [#allocation4], 4294967168 }
  0x91   :  { %38 = vsyncpa [#allocation3], 1 }
  0x92   :  { %39 = vsyncpa [#allocation4], 1 }

</bundles_post_ra>
